<compile_context>
chip_gen: v7x
topology: tpu7x:2x2x1
jax: 0.10.0
libtpu: 0.0.40
codegen_flags: <defaults>
</compile_context>

<pallas_src>
from typing import NamedTuple

import jax
import jax.numpy as jnp
from jax.experimental import pallas as pl
from jax.experimental.pallas import tpu as pltpu


def _round_up(x, m):
    return (x + m - 1) // m * m


class MVNParams(NamedTuple):
    """Parameterization of the returned MultivariateNormal."""
    mean: jax.Array         # [B, D]
    covariance: jax.Array   # [B, D, D]


def _gvd_kernel(x_ref, t_ref, w1x_ref, w1t_ref, b1_ref, w2_ref, b2_ref,
                mu_ref, sd_ref):
    """Fused MLP(mu) + Gaussian covariance diag for one batch tile.

    Per-tile shapes:
      x_ref : [TB, F]   f32      w1x : [F, Hp]  bf16     w2 : [Hp, Dp] bf16
      t_ref : [TB, 1]   f32      w1t : [1, Hp]  f32      b2 : [1, Dp]  f32
                                 b1  : [1, Hp]  f32
      mu_ref: [TB, Dp]  f32      sd_ref: [TB, Dp] f32  (diag of covariance)
    """
    x = x_ref[...]
    t = t_ref[...]

    # cat([x_t, t]) @ W1 fused as split-weight form (no host-side concat).
    h = jnp.dot(x.astype(jnp.bfloat16), w1x_ref[...],
                preferred_element_type=jnp.float32)
    h = h + t * w1t_ref[...] + b1_ref[...]
    h = h * jax.nn.sigmoid(h)                     # SiLU in f32 (v5e-friendly)

    mu = jnp.dot(h.astype(jnp.bfloat16), w2_ref[...],
                 preferred_element_type=jnp.float32) + b2_ref[...]
    mu_ref[...] = mu.astype(mu_ref.dtype)

    # sigma = (1 - (1 - 0.01) * clamp(t, 0, 1))**2 * I  -> constant diag per row
    tc = jnp.clip(t, 0.0, 1.0)
    var = (1.0 - (1.0 - 0.01) * tc) ** 2          # [TB, 1]
    sd_ref[...] = jnp.broadcast_to(var, sd_ref.shape).astype(sd_ref.dtype)


def gaussian_variational_dist_forward(params, x_t, t, d_out):
    """Pallas-backed forward of GaussianVariationalDist.

    Returns MVNParams(mean=[B, d_out], covariance=[B, d_out, d_out]).
    """
    w1x, w1t, b1, w2, b2 = params
    B, F = x_t.shape
    Hp = w1x.shape[1]
    Dp = w2.shape[1]

    # torch: if t.shape == (): t = t.expand(x_t.size(0))
    if t.ndim == 0:
        t = jnp.broadcast_to(t, (B,))
    if t.ndim == 1:
        t = t[:, None]
    t = t.astype(jnp.float32)
    x_t = x_t.astype(jnp.float32)

    # Batch tile: lane-dense outputs, sized against the v7x 64 MiB VMEM budget.
    TB = 512 if B >= 512 else _round_up(B, 8)
    Bp = _round_up(B, TB)
    if Bp != B:
        x_t = jnp.pad(x_t, ((0, Bp - B), (0, 0)))
        t = jnp.pad(t, ((0, Bp - B), (0, 0)))

    grid = (Bp // TB,)

    flops = 2 * Bp * F * Hp + 2 * Bp * Hp * Dp
    bytes_accessed = (Bp * (F + 1) * 4                       # x_t, t
                      + (F * Hp + Hp * Dp) * 2               # bf16 weights
                      + (2 * Hp + Dp) * 4                    # w1t, b1, b2
                      + 2 * Bp * Dp * 4)                     # mu, sigma diag
    cost = pl.CostEstimate(flops=flops, transcendentals=Bp * Hp,
                           bytes_accessed=bytes_accessed)

    mu_pad, sd_pad = pl.pallas_call(
        _gvd_kernel,
        out_shape=(jax.ShapeDtypeStruct((Bp, Dp), jnp.float32),
                   jax.ShapeDtypeStruct((Bp, Dp), jnp.float32)),
        grid=grid,
        in_specs=[
            pl.BlockSpec((TB, F), lambda i: (i, 0)),    # x_t tile
            pl.BlockSpec((TB, 1), lambda i: (i, 0)),    # t tile
            pl.BlockSpec((F, Hp), lambda i: (0, 0)),    # W1 (x rows) - resident
            pl.BlockSpec((1, Hp), lambda i: (0, 0)),    # W1 (t row)  - resident
            pl.BlockSpec((1, Hp), lambda i: (0, 0)),    # b1          - resident
            pl.BlockSpec((Hp, Dp), lambda i: (0, 0)),   # W2          - resident
            pl.BlockSpec((1, Dp), lambda i: (0, 0)),    # b2          - resident
        ],
        out_specs=(pl.BlockSpec((TB, Dp), lambda i: (i, 0)),
                   pl.BlockSpec((TB, Dp), lambda i: (i, 0))),
        compiler_params=pltpu.CompilerParams(
            dimension_semantics=("parallel",)),
        cost_estimate=cost,
    )(x_t, t, w1x, w1t, b1, w2, b2)

    mu = mu_pad[:B, :d_out]
    var = sd_pad[:B, 0]                                   # [B]
    cov = var[:, None, None] * jnp.eye(d_out, dtype=mu.dtype)[None]
    return MVNParams(mean=mu, covariance=cov)


def init_params(num_feat, hidden, d_out, key):
    """Synthetic parameters for the wrapped MLP, pre-padded/pre-cast for the kernel."""
    k1, k2 = jax.random.split(key)
    d_in = num_feat + 1                                   # cat([x_t, t]) width
    Hp = _round_up(hidden, 128)
    Dp = _round_up(d_out, 128)

    w1 = jax.random.normal(k1, (d_in, hidden), jnp.float32) / jnp.sqrt(d_in)
    w2 = jax.random.normal(k2, (hidden, d_out), jnp.float32) / jnp.sqrt(hidden)
    b1 = jnp.zeros((hidden,), jnp.float32)
    b2 = jnp.zeros((d_out,), jnp.float32)

    # Pad hidden/output lane axes to 128 with zeros; split W1 into x-part / t-row.
    w1_pad = jnp.zeros((d_in, Hp), jnp.float32).at[:, :hidden].set(w1)
    w2_pad = jnp.zeros((Hp, Dp), jnp.float32).at[:hidden, :d_out].set(w2)
    b1_pad = jnp.zeros((1, Hp), jnp.float32).at[0, :hidden].set(b1)
    b2_pad = jnp.zeros((1, Dp), jnp.float32).at[0, :d_out].set(b2)

    w1x = w1_pad[:num_feat].astype(jnp.bfloat16)          # [F, Hp]  bf16 matmul op
    w1t = w1_pad[num_feat:num_feat + 1]                   # [1, Hp]  f32 (VPU add)
    w2b = w2_pad.astype(jnp.bfloat16)                     # [Hp, Dp] bf16 matmul op
    return (w1x, w1t, b1_pad, w2b, b2_pad)


def reference_forward(params, x_t, t, d_out):
    """Pure-JAX (f32) reference using the same (padded, bf16-rounded) weights."""
    w1x, w1t, b1, w2, b2 = params
    if t.ndim == 0:
        t = jnp.broadcast_to(t, (x_t.shape[0],))
    if t.ndim == 1:
        t = t[:, None]
    t = t.astype(jnp.float32)

    w1 = jnp.concatenate([w1x.astype(jnp.float32), w1t], axis=0)
    xin = jnp.concatenate([x_t, t], axis=-1)
    h = xin @ w1 + b1
    h = h * jax.nn.sigmoid(h)
    mu = (h @ w2.astype(jnp.float32) + b2)[:, :d_out]

    tc = jnp.clip(t, 0.0, 1.0)
    var = (1.0 - 0.99 * tc) ** 2                          # [B, 1]
    cov = var[:, :, None] * jnp.eye(d_out, dtype=mu.dtype)[None]
    return mu, cov


if __name__ == "__main__":
    key = jax.random.PRNGKey(0)
    k_param, k_x, k_t = jax.random.split(key, 3)

    batch = 8
    num_feat = 4
    hidden = 32
    d_out = num_feat

    params = init_params(num_feat, hidden, d_out, k_param)
    x_t = jax.random.normal(k_x, (batch, num_feat), jnp.float32)
    t = jax.random.uniform(k_t, (batch,), jnp.float32)

    dist = gaussian_variational_dist_forward(params, x_t, t, d_out)
    dist = jax.block_until_ready(dist)

    mu_ref, cov_ref = reference_forward(params, x_t, t, d_out)

    assert dist.mean.shape == (batch, d_out)
    assert dist.covariance.shape == (batch, d_out, d_out)
    # bf16 matmul operands in the kernel vs f32 reference -> relaxed tolerance.
    assert jnp.allclose(dist.mean, mu_ref, atol=2e-2, rtol=2e-2)
    assert jnp.allclose(dist.covariance, cov_ref, atol=1e-5, rtol=1e-5)

    print("KERNEL_OK")
</pallas_src>

<mosaic_0001>
module attributes {stable_mosaic.version = 11 : i64} {
  func.func @_gvd_kernel(%arg0: i32, %arg1: memref<8x4xf32, #tpu.memory_space<vmem>>, %arg2: memref<8x1xf32, #tpu.memory_space<vmem>>, %arg3: memref<4x128xbf16, #tpu.memory_space<vmem>>, %arg4: memref<1x128xf32, #tpu.memory_space<vmem>>, %arg5: memref<1x128xf32, #tpu.memory_space<vmem>>, %arg6: memref<128x128xbf16, #tpu.memory_space<vmem>>, %arg7: memref<1x128xf32, #tpu.memory_space<vmem>>, %arg8: memref<8x128xf32, #tpu.memory_space<vmem>>, %arg9: memref<8x128xf32, #tpu.memory_space<vmem>>) attributes {dimension_semantics = [#tpu.dimension_semantics<parallel>], iteration_bounds = array<i64: 1>, scalar_prefetch = 0 : i64, scratch_operands = 0 : i64, tpu.core_type = #tpu.core_type<tc>, window_params = [{transform_indices = @transform_0, window_bounds = array<i64: 8, 4>}, {transform_indices = @transform_1, window_bounds = array<i64: 8, 1>}, {pipeline_mode = #tpu.pipeline_mode<synchronous>, transform_indices = @transform_2, window_bounds = array<i64: 4, 128>}, {pipeline_mode = #tpu.pipeline_mode<synchronous>, transform_indices = @transform_3, window_bounds = array<i64: 1, 128>}, {pipeline_mode = #tpu.pipeline_mode<synchronous>, transform_indices = @transform_4, window_bounds = array<i64: 1, 128>}, {pipeline_mode = #tpu.pipeline_mode<synchronous>, transform_indices = @transform_5, window_bounds = array<i64: 128, 128>}, {pipeline_mode = #tpu.pipeline_mode<synchronous>, transform_indices = @transform_6, window_bounds = array<i64: 1, 128>}, {transform_indices = @transform_7, window_bounds = array<i64: 8, 128>}, {transform_indices = @transform_8, window_bounds = array<i64: 8, 128>}]} {
    %c0 = arith.constant 0 : index
    %c0_0 = arith.constant 0 : index
    %0 = vector.load %arg1[%c0, %c0_0] : memref<8x4xf32, #tpu.memory_space<vmem>>, vector<8x4xf32>
    %c0_1 = arith.constant 0 : index
    %c0_2 = arith.constant 0 : index
    %1 = vector.load %arg2[%c0_1, %c0_2] : memref<8x1xf32, #tpu.memory_space<vmem>>, vector<8x1xf32>
    %2 = arith.truncf %0 : vector<8x4xf32> to vector<8x4xbf16>
    %c0_3 = arith.constant 0 : index
    %c0_4 = arith.constant 0 : index
    %3 = vector.load %arg3[%c0_3, %c0_4] : memref<4x128xbf16, #tpu.memory_space<vmem>>, vector<4x128xbf16>
    %cst = arith.constant dense<0.000000e+00> : vector<8x128xf32>
    %4 = tpu.matmul %2, %3, %cst {dimension_numbers = #tpu.dot_dimension_numbers<[1], [0], [0], [1], [0, 0, 1, 1], [], []>} : vector<8x4xbf16>, vector<4x128xbf16>, vector<8x128xf32> -> vector<8x128xf32>
    %c0_5 = arith.constant 0 : index
    %c0_6 = arith.constant 0 : index
    %5 = vector.load %arg4[%c0_5, %c0_6] : memref<1x128xf32, #tpu.memory_space<vmem>>, vector<1x128xf32>
    %6 = vector.broadcast %1 : vector<8x1xf32> to vector<8x128xf32>
    %7 = vector.broadcast %5 : vector<1x128xf32> to vector<8x128xf32>
    %8 = arith.mulf %6, %7 : vector<8x128xf32>
    %9 = arith.addf %4, %8 : vector<8x128xf32>
    %c0_7 = arith.constant 0 : index
    %c0_8 = arith.constant 0 : index
    %10 = vector.load %arg5[%c0_7, %c0_8] : memref<1x128xf32, #tpu.memory_space<vmem>>, vector<1x128xf32>
    %11 = vector.broadcast %10 : vector<1x128xf32> to vector<8x128xf32>
    %12 = arith.addf %9, %11 : vector<8x128xf32>
    %13 = arith.negf %12 : vector<8x128xf32>
    %14 = math.exp %13 : vector<8x128xf32>
    %cst_9 = arith.constant 1.000000e+00 : f32
    %15 = vector.broadcast %cst_9 : f32 to vector<8x128xf32>
    %16 = arith.addf %15, %14 : vector<8x128xf32>
    %17 = arith.divf %15, %16 : vector<8x128xf32>
    %18 = arith.mulf %12, %17 : vector<8x128xf32>
    %19 = arith.truncf %18 : vector<8x128xf32> to vector<8x128xbf16>
    %c0_10 = arith.constant 0 : index
    %c0_11 = arith.constant 0 : index
    %20 = vector.load %arg6[%c0_10, %c0_11] : memref<128x128xbf16, #tpu.memory_space<vmem>>, vector<128x128xbf16>
    %cst_12 = arith.constant dense<0.000000e+00> : vector<8x128xf32>
    %21 = tpu.matmul %19, %20, %cst_12 {dimension_numbers = #tpu.dot_dimension_numbers<[1], [0], [0], [1], [0, 0, 1, 1], [], []>} : vector<8x128xbf16>, vector<128x128xbf16>, vector<8x128xf32> -> vector<8x128xf32>
    %c0_13 = arith.constant 0 : index
    %c0_14 = arith.constant 0 : index
    %22 = vector.load %arg7[%c0_13, %c0_14] : memref<1x128xf32, #tpu.memory_space<vmem>>, vector<1x128xf32>
    %23 = vector.broadcast %22 : vector<1x128xf32> to vector<8x128xf32>
    %24 = arith.addf %21, %23 : vector<8x128xf32>
    %c0_15 = arith.constant 0 : index
    %c0_16 = arith.constant 0 : index
    %25 = vector.load %arg8[%c0_15, %c0_16] : memref<8x128xf32, #tpu.memory_space<vmem>>, vector<8x128xf32>
    tpu.vector_store %arg8[%c0_15, %c0_16], %24 {strides = array<i32>} : memref<8x128xf32, #tpu.memory_space<vmem>>, vector<8x128xf32>,
    %cst_17 = arith.constant 0.000000e+00 : f32
    %cst_18 = arith.constant 1.000000e+00 : f32
    %26 = vector.broadcast %cst_17 : f32 to vector<8x1xf32>
    %27 = arith.maximumf %26, %1 : vector<8x1xf32>
    %28 = vector.broadcast %cst_18 : f32 to vector<8x1xf32>
    %29 = arith.minimumf %28, %27 : vector<8x1xf32>
    %cst_19 = arith.constant 9.900000e-01 : f32
    %30 = vector.broadcast %cst_19 : f32 to vector<8x1xf32>
    %31 = arith.mulf %30, %29 : vector<8x1xf32>
    %cst_20 = arith.constant 1.000000e+00 : f32
    %32 = vector.broadcast %cst_20 : f32 to vector<8x1xf32>
    %33 = arith.subf %32, %31 : vector<8x1xf32>
    %34 = arith.mulf %33, %33 : vector<8x1xf32>
    %35 = vector.shape_cast %34 : vector<8x1xf32> to vector<8x1xf32>
    %36 = vector.broadcast %35 : vector<8x1xf32> to vector<8x128xf32>
    %c0_21 = arith.constant 0 : index
    %c0_22 = arith.constant 0 : index
    %37 = vector.load %arg9[%c0_21, %c0_22] : memref<8x128xf32, #tpu.memory_space<vmem>>, vector<8x128xf32>
    tpu.vector_store %arg9[%c0_21, %c0_22], %36 {strides = array<i32>} : memref<8x128xf32, #tpu.memory_space<vmem>>, vector<8x128xf32>,
    return
  }
  func.func @transform_0(%arg0: i32) -> (i32, i32) {
    %c0_i32 = arith.constant 0 : i32
    %c0_i32_0 = arith.constant 0 : i32
    return %arg0, %c0_i32 : i32, i32
  }
  func.func @transform_1(%arg0: i32) -> (i32, i32) {
    %c0_i32 = arith.constant 0 : i32
    %c0_i32_0 = arith.constant 0 : i32
    return %arg0, %c0_i32 : i32, i32
  }
  func.func @transform_2(%arg0: i32) -> (i32, i32) {
    %c0_i32 = arith.constant 0 : i32
    %c0_i32_0 = arith.constant 0 : i32
    %c0_i32_1 = arith.constant 0 : i32
    return %c0_i32, %c0_i32_0 : i32, i32
  }
  func.func @transform_3(%arg0: i32) -> (i32, i32) {
    %c0_i32 = arith.constant 0 : i32
    %c0_i32_0 = arith.constant 0 : i32
    %c0_i32_1 = arith.constant 0 : i32
    return %c0_i32, %c0_i32_0 : i32, i32
  }
  func.func @transform_4(%arg0: i32) -> (i32, i32) {
    %c0_i32 = arith.constant 0 : i32
    %c0_i32_0 = arith.constant 0 : i32
    %c0_i32_1 = arith.constant 0 : i32
    return %c0_i32, %c0_i32_0 : i32, i32
  }
  func.func @transform_5(%arg0: i32) -> (i32, i32) {
    %c0_i32 = arith.constant 0 : i32
    %c0_i32_0 = arith.constant 0 : i32
    %c0_i32_1 = arith.constant 0 : i32
    return %c0_i32, %c0_i32_0 : i32, i32
  }
  func.func @transform_6(%arg0: i32) -> (i32, i32) {
    %c0_i32 = arith.constant 0 : i32
    %c0_i32_0 = arith.constant 0 : i32
    %c0_i32_1 = arith.constant 0 : i32
    return %c0_i32, %c0_i32_0 : i32, i32
  }
  func.func @transform_7(%arg0: i32) -> (i32, i32) {
    %c0_i32 = arith.constant 0 : i32
    %c0_i32_0 = arith.constant 0 : i32
    return %arg0, %c0_i32 : i32, i32
  }
  func.func @transform_8(%arg0: i32) -> (i32, i32) {
    %c0_i32 = arith.constant 0 : i32
    %c0_i32_0 = arith.constant 0 : i32
    return %arg0, %c0_i32 : i32, i32
  }
}

</mosaic_0001>

<bundles_post_ra>
// kernel: tpu_custom_call.1
= control target key start
LH: loop header
LB: loop body
LE: loop exit
PB: predicated region body
PF: predicated region fallthrough
CT: control target
= control target key end

     0   :  { %14 = vsyncpa [#allocation3], 0  ;;  %s528_s0 = inlined_call_operand.vmem [shape: f32[8,4], index: 0, kind: input, shape index: {}]   ;;  %s529_s1 = inlined_call_operand.vmem [shape: f32[8,1], index: 1, kind: input, shape index: {}]   ;;  %s530_s2 = inlined_call_operand.vmem [shape: bf16[4,128], index: 2, kind: input, shape index: {}]   ;;  %s531_s3 = inlined_call_operand.vmem [shape: f32[1,128], index: 3, kind: input, shape index: {}]   ;;  %s532_s4 = inlined_call_operand.vmem [shape: f32[1,128], index: 4, kind: input, shape index: {}]   ;;  %s533_s5 = inlined_call_operand.hbm [shape: bf16[128,128], index: 5, kind: input, shape index: {}]   ;;  %s534_s6 = inlined_call_operand.vmem [shape: f32[1,128], index: 6, kind: input, shape index: {}]   ;;  %s535_s7 = inlined_call_operand.hbm [shape: f32[8,128], index: 7, kind: output, shape index: {0}]   ;;  %s536_s8 = inlined_call_operand.hbm [shape: f32[8,128], index: 8, kind: output, shape index: {1}]  }
   0x1   :  { %15 = vsyncpa [#allocation4], 0 }
   0x2   :  { %16 = vsyncpa [#allocation7], 0  ;;  %s421_s27 = smov [#allocation2]   ;;  %s349_s9 = scalar_lea.hbm %s533_s5, 1024 }
   0x3   :  { %s32_s28 = sshll.u32 %s421_s27, 4  ;;  %p350_p0 = scmp.ne.s32.totalorder %s533_s5, %s349_s9  ;;  %s33_s28 = int_to_ptr.vmem [resolvable:$true] %s32_s28 }
   0x4   :  { %p353_p1 = scmp.lt.u32.totalorder %s349_s9, %s533_s5 }
   0x6   :  { %p355_p2 = pnand %p353_p1, %p350_p0 }
   0x8   :  { %358 = shalt.err (!%p355_p2)
}
   0x9   :  { %s359_s14 = scalar_lea.vmem %s33_s28, 1024  ;;  %p364_p4 = scmp.lt.s32.totalorder %s33_s28, %s33_s28 }
   0xa   :  { %p360_p3 = scmp.ne.s32.totalorder %s33_s28, %s359_s14  ;;  %p365_p5 = scmp.lt.s32.totalorder %s359_s14, %s359_s14 }
   0xc   :  { %p366_p6 = por %p365_p5, %p364_p4 }
   0xe   :  { %p367_p7 = pnand %p366_p6, %p360_p3 }
  0x10   :  { %370 = shalt.err (!%p367_p7)
}
  0x11   :  { %s422_s15 = smov 64   ;;  %s423_s16 = smov 4  }
  0x12   :  { %38 = dma.hbm_to_vmem [thread:$0]  %s533_s5, 1024, %s33_s28, [#allocation3], %s422_s15, %s422_s15, %s423_s16  }
  0x13   :  { %415 = dma.done.wait [#allocation3], 1024  }
  0x14   :  { %416 = vsyncadd [#allocation3], 4294966272  ;;  %v424_v0 = vmov 0.0   ;;  %vm425_vm0 = vmmov 0   ;;  %v426_v1 = vmov 0   ;;  %vm66_vm1 = vcmask 1041408  }
  0x15   :  { %302 = vmatprep.subr.bf16.mxu0 %v424_v0  ;;  %304 = vmatprep.mubr.msk.bf16.mxu0 %vm425_vm0, %v424_v0  ;;  %v48_v2 = vld [vmem:[%s530_s2] sm:$0x3]  ;;  %vm62_vm2 = vcmask 31744   ;;  %v337_v12 = vld [vmem:[#allocation2] sm:$0xff]   ;;  %v338_v13 = vld [vmem:[#allocation2 + $0x8] sm:$0xff]  }
  0x16   :  { %336 = vset.pattern.permute.xlu0 %v426_v1  ;;  %308 = vmatprep.subr.bf16.mxu1 %v424_v0  ;;  %v45_v3 = vld [vmem:[%s528_s0] sm:$0xff]  ;;  %v68_v5 = vsel %vm66_vm1, %v48_v2, 0  ;;  %v339_v14 = vld [vmem:[#allocation2 + $0x10] sm:$0xff]   ;;  %v341_v16 = vld [vmem:[#allocation2 + $0x20] sm:$0xff]  }
  0x17   :  { %324 = vmatprep.mubr.msk.bf16.mxu1 %vm425_vm0, %v424_v0  ;;  %v46_v4 = vld [vmem:[%s529_s1] sm:$0xff]  ;;  %v47_v6 = vpack.c.bf16 %v45_v3, %v45_v3  ;;  %303 = vmatpush3.bf16.msra.mxu0 %v68_v5  ;;  %v342_v17 = vld [vmem:[#allocation2 + $0x28] sm:$0xff]   ;;  %v343_v18 = vld [vmem:[#allocation2 + $0x30] sm:$0xff]  }
  0x18   :  { %52 = vperm.xlu0 %336, %v46_v4   ;;  %v238_v7 = vmax.f32 %v46_v4, 0.0  ;;  %309 = vmatpush3.bf16.msra.mxu1 %v337_v12  ;;  %v340_v15 = vld [vmem:[#allocation2 + $0x18] sm:$0xff]  }
  0x19   :  { %310 = vmatprep.subr.bf16.mxu1 %v424_v0  ;;  %v344_v19 = vld [vmem:[#allocation2 + $0x38] sm:$0xff]  }
  0x1a   :  { %v239_v8 = vmin.f32 %v238_v7, 1.0  ;;  %305 = vmatmul.mubr.msk.bf16.vlgmr.msra.gmra.mrb[0].mxu0 %vm62_vm2, %v47_v6  ;;  %v278_v22 = vld [vmem:[%s531_s3] ss:$0 sm:$0xff]  ;;  %s427_s3 = smov [#allocation6]  }
  0x1b   :  { %v280_v25 = vld [vmem:[%s532_s4] ss:$0 sm:$0xff]  ;;  %s265_s25 = sshll.u32 %s427_s3, 4  ;;  %s266_s25 = int_to_ptr.vmem [resolvable:$true] %s265_s25 }
  0x1c   :  { %v240_v9 = vmul.f32 0.99, %v239_v8  ;;  %311 = vmatpush3.bf16.msra.mxu1 %v338_v13  ;;  %s371_s26 = scalar_lea.vmem %s266_s25, 128  ;;  %p376_p9 = scmp.lt.s32.totalorder %s266_s25, %s266_s25 }
  0x1d   :  { %312 = vmatprep.subr.bf16.mxu1 %v424_v0  ;;  %p372_p8 = scmp.ne.s32.totalorder %s266_s25, %s371_s26  ;;  %p377_p10 = scmp.lt.s32.totalorder %s371_s26, %s371_s26 }
  0x1e   :  { %v241_v10 = vsub.f32 1.0, %v240_v9 }
  0x1f   :  { %p378_p11 = por %p377_p10, %p376_p9 }
  0x20   :  { %v242_v11 = vmul.f32 %v241_v10, %v241_v10  ;;  %313 = vmatpush3.bf16.msra.mxu1 %v339_v14 }
  0x21   :  { %314 = vmatprep.subr.bf16.mxu1 %v424_v0  ;;  %p379_p12 = pnand %p378_p11, %p372_p8 }
  0x22   :  { %245 = vperm.xlu0 %336, %v242_v11  }
  0x24   :  { %315 = vmatpush3.bf16.msra.mxu1 %v340_v15 }
  0x25   :  { %316 = vmatprep.subr.bf16.mxu1 %v424_v0 }
  0x28   :  { %317 = vmatpush3.bf16.msra.mxu1 %v341_v16 }
  0x29   :  { %318 = vmatprep.subr.bf16.mxu1 %v424_v0 }
  0x2c   :  { %319 = vmatpush3.bf16.msra.mxu1 %v342_v17 }
  0x2d   :  { %320 = vmatprep.subr.bf16.mxu1 %v424_v0 }
  0x30   :  { %321 = vmatpush3.bf16.msra.mxu1 %v343_v18 }
  0x31   :  { %322 = vmatprep.subr.bf16.mxu1 %v424_v0 }
  0x34   :  { %323 = vmatpush3.bf16.msra.mxu1 %v344_v19 }
  0x97   :  { %v53_v20 = vpop.permute.xlu0 %52 }
  0x98   :  { %v61_v23 = vmul.f32 %v278_v22, %v53_v20 }
  0xa1   :  { %v246_v21 = vpop.permute.xlu0 %245 }
  0xa2   :  { %248 = vst [vmem:[#allocation6] sm:$0xff] %v246_v21 }
  0xed   :  { %v104_v24 = vpop.f32.mrb[0].mxu0 }
  0xee   :  { %v105_v26 = vadd.f32 %v104_v24, %v61_v23  ;;  %v306_v27 = vpop.f32.mrb[1].mxu0 }
  0xef   :  { %v107_v28 = vpop.f32.mrb[2].mxu0 }
  0xf0   :  { %v117_v29 = vadd.f32 %v280_v25, %v105_v26  ;;  %v307_v30 = vpop.f32.mrb[3].mxu0 }
  0xf2   :  { %v281_v31 = vmul.f32 -1.442695, %v117_v29 }
  0xf4   :  { %345 = vpow2.f32 %v281_v31 }
  0xfe   :  { %v346_v32 = vpop.eup %345 }
  0xff   :  { %v121_v33 = vadd.f32 1.0, %v346_v32 }
 0x101   :  { %347 = vrcp.f32 %v121_v33 }
 0x10b   :  { %v348_v34 = vpop.eup %347 }
 0x10c   :  { %v124_v35 = vmul.f32 %v348_v34, %v117_v29 }
 0x10e   :  { %v125_v36 = vpack.c.bf16 %v124_v35, %v124_v35 }
 0x110   :  { %325 = vmatmul.mubr.bf16.vlgmr.msra.gmra.mrb[0].mxu1 %v125_v36 }
 0x111   :  { %382 = shalt.err (!%p379_p12)
}
 0x112   :  { %s383_s28 = scalar_lea.hbm %s536_s8, 128 }
 0x113   :  { %p384_p13 = scmp.ne.s32.totalorder %s536_s8, %s383_s28  ;;  %p387_p0 = scmp.lt.u32.totalorder %s383_s28, %s536_s8 }
 0x115   :  { %p389_p1 = pnand %p387_p0, %p384_p13 }
 0x117   :  { %392 = shalt.err (!%p389_p1)
}
 0x118   :  { %268 = dma.vmem_to_hbm [thread:$0]  %s266_s25, 128, %s536_s8, [#allocation7]   ;;  %v282_v37 = vld [vmem:[%s534_s6] ss:$0 sm:$0xff] }
 0x119   :  { %s428_s15 = smov [#allocation5]  }
 0x11a   :  { %s255_s16 = sshll.u32 %s428_s15, 4  ;;  %s256_s16 = int_to_ptr.vmem [resolvable:$true] %s255_s16 }
 0x11b   :  { %s393_s17 = scalar_lea.vmem %s256_s16, 128  ;;  %p398_p3 = scmp.lt.s32.totalorder %s256_s16, %s256_s16 }
 0x11c   :  { %p394_p2 = scmp.ne.s32.totalorder %s256_s16, %s393_s17  ;;  %p399_p4 = scmp.lt.s32.totalorder %s393_s17, %s393_s17 }
 0x11e   :  { %p400_p5 = por %p399_p4, %p398_p3 }
 0x120   :  { %p401_p6 = pnand %p400_p5, %p394_p2 }
 0x1e3   :  { %v231_v38 = vpop.f32.mrb[0].mxu1 }
 0x1e4   :  { %v232_v39 = vadd.f32 %v282_v37, %v231_v38  ;;  %v326_v40 = vpop.f32.mrb[1].mxu1 }
 0x1e5   :  { %v234_v41 = vpop.f32.mrb[2].mxu1 }
 0x1e6   :  { %237 = vst [vmem:[#allocation5] sm:$0xff] %v232_v39  ;;  %v327_v42 = vpop.f32.mrb[3].mxu1 }
 0x1e7   :  { %404 = shalt.err (!%p401_p6)
}
 0x1e8   :  { %s405_s6 = scalar_lea.hbm %s535_s7, 128 }
 0x1e9   :  { %p406_p7 = scmp.ne.s32.totalorder %s535_s7, %s405_s6  ;;  %p409_p8 = scmp.lt.u32.totalorder %s405_s6, %s535_s7 }
 0x1eb   :  { %p411_p9 = pnand %p409_p8, %p406_p7 }
 0x1ed   :  { %414 = shalt.err (!%p411_p9)
}
 0x1ee   :  { %258 = dma.vmem_to_hbm [thread:$0]  %s256_s16, 128, %s535_s7, [#allocation4]  }
 0x1ef   :  { %417 = dma.done.wait [#allocation4], 128  }
 0x1f0   :  { %418 = vsyncadd [#allocation4], 4294967168 }
 0x1f1   :  { %419 = dma.done.wait [#allocation7], 128  }
 0x1f2   :  { %420 = vsyncadd [#allocation7], 4294967168 }
 0x1f3   :  { %275 = vsyncpa [#allocation3], 1 }
 0x1f4   :  { %276 = vsyncpa [#allocation4], 1 }
 0x1f5   :  { %277 = vsyncpa [#allocation7], 1 }

</bundles_post_ra>
